<compile_context>
chip_gen: v6e
topology: v6e:2x2x1
jax: 0.10.0
libtpu: 0.0.40
codegen_flags: <defaults>
</compile_context>

<pallas_src>
import functools

import jax
import jax.numpy as jnp
from jax import lax
from jax.experimental import pallas as pl
from jax.experimental.pallas import tpu as pltpu


def _round_up(x, m):
    return ((x + m - 1) // m) * m


def _gemv_softmax_kernel(v_ref, enc_ref, out_ref, m_ref, *, seq_len, tile):
    i = pl.program_id(0)
    nt = pl.num_programs(0)

    @pl.when(i == 0)
    def _init():
        m_ref[...] = jnp.full_like(m_ref, -jnp.inf)

    # Lane-dense partial scores for this tile: (1, tile) = v (1,H) . enc_tile^T,
    # contraction over the trailing H axis of both operands (q.kT pattern, stays
    # on the MXU), f32 accumulation.
    part = lax.dot_general(
        v_ref[...], enc_ref[...],
        dimension_numbers=(((1,), (1,)), ((), ())),
        preferred_element_type=jnp.float32)                       # (1, tile) f32

    # Mask padded trailing positions (only the last tile has any) at store
    # time; this select is free filler under the DMA-bound loop and removes
    # all masking work from the serialized finalize tail.
    pos = i * tile + lax.broadcasted_iota(jnp.int32, (1, tile), 1)
    row = jnp.where(pos < seq_len, part, -jnp.inf)

    # Raw scores go straight into the resident output block (tiles on
    # sublanes, positions on lanes).  Running max is tracked per tile so the
    # finalize only does exp + sum + normalize.
    out_ref[pl.ds(i, 1), :] = row
    m_ref[...] = jnp.maximum(m_ref[...], jnp.max(row, axis=1, keepdims=True))

    @pl.when(i == nt - 1)
    def _finalize():
        s = out_ref[...]                                          # (nt, tile) f32
        e = jnp.exp(s - m_ref[...])
        denom = jnp.sum(jnp.sum(e, axis=1, keepdims=True), axis=0, keepdims=True)
        # Exact reciprocal: keeps 1e-5 f32 parity with the reference softmax.
        out_ref[...] = e * pl.reciprocal(denom)


def concat_attention(hidden, encoder_outputs, W, b, other, *,
                     compute_dtype=jnp.bfloat16,
                     target_tile_bytes=8 * 1024 * 1024):
    """hidden: (1, H); encoder_outputs: (S, 1, H) or (S, H);
    W: (H, 2H); b: (H,); other: (1, H).  Returns attention weights (1, 1, S).

    compute_dtype controls the enc/v streaming dtype (bf16 default: the kernel
    is HBM-bandwidth bound).  Accumulation and softmax are always f32.
    """
    enc = encoder_outputs.reshape(encoder_outputs.shape[0], -1)   # (S, H)
    S, H = enc.shape

    Wf = W.astype(jnp.float32)
    oth = other.reshape(H).astype(jnp.float32)

    # Fold `other` into the concat-Linear:  e_i = c0 + enc_i . v, with
    # c0 = other.(Wh@hidden + b) constant over i -> cancels in softmax, dropped.
    v = (oth @ Wf[:, H:]).reshape(1, H)                           # (1, H) f32

    # --- Tile the sequence axis by BYTES, rows aligned to 128 ---------------
    itemsize = jnp.dtype(compute_dtype).itemsize
    align = 128                                   # lane-dense score rows; covers
                                                  # bf16's 16-row sublane packing
    rows_cap = max(align, (int(target_tile_bytes) // (H * itemsize)) // align * align)
    num_tiles = -(-S // rows_cap)                                 # ceil-div
    tile = _round_up(-(-S // num_tiles), align)                   # balanced tiles
    s_pad = tile * num_tiles

    enc_c = enc.astype(compute_dtype)
    if s_pad != S:
        enc_c = jnp.pad(enc_c, ((0, s_pad - S), (0, 0)))
    v_c = v.astype(compute_dtype)

    # --- VMEM budget from actual buffer sizes (+ slack); safe on v7x 64 MiB --
    enc_buf_bytes = 2 * tile * H * itemsize                       # double-buffered
    out_bytes = 2 * _round_up(num_tiles, 8) * tile * 4            # resident scores
    v_bytes = 2 * 8 * _round_up(H, 128) * itemsize
    vmem_limit = int(min(max(enc_buf_bytes + out_bytes + v_bytes + (4 << 20),
                             16 << 20),
                         96 << 20))

    kernel = functools.partial(_gemv_softmax_kernel, seq_len=S, tile=tile)

    out = pl.pallas_call(
        kernel,
        out_shape=jax.ShapeDtypeStruct((num_tiles, tile), jnp.float32),
        grid_spec=pltpu.PrefetchScalarGridSpec(
            num_scalar_prefetch=0,
            grid=(num_tiles,),
            in_specs=[
                pl.BlockSpec((1, H), lambda i: (0, 0)),           # v, resident
                pl.BlockSpec((tile, H), lambda i: (i, 0)),        # enc, streamed
            ],
            out_specs=pl.BlockSpec((num_tiles, tile), lambda i: (0, 0)),
            scratch_shapes=[pltpu.VMEM((1, 1), jnp.float32)],     # running max
        ),
        compiler_params=pltpu.CompilerParams(
            dimension_semantics=("arbitrary",),   # output resident across grid
            vmem_limit_bytes=vmem_limit,
        ),
    )(v_c, enc_c)

    return out.reshape(s_pad)[:S].reshape(1, 1, S)


if __name__ == "__main__":
    H, S = 32, 8
    key = jax.random.PRNGKey(0)
    k_w, k_b, k_o, k_h, k_e = jax.random.split(key, 5)

    # Deterministic parameter init (nn.Linear-style uniform for W, b; `other`
    # is an uninitialized nn.Parameter in the original module -> normal init).
    bound = 1.0 / jnp.sqrt(jnp.float32(2 * H))
    W = jax.random.uniform(k_w, (H, 2 * H), jnp.float32, -bound, bound)
    b = jax.random.uniform(k_b, (H,), jnp.float32, -bound, bound)
    other = jax.random.normal(k_o, (1, H), jnp.float32)

    # Inputs matching the PyTorch forward convention.
    hidden = jax.random.normal(k_h, (1, H), jnp.float32)
    encoder_outputs = jax.random.normal(k_e, (S, 1, H), jnp.float32)

    # Pure-JAX reference of the PyTorch forward (concat -> Linear -> dot -> softmax).
    enc = encoder_outputs.reshape(S, H)
    cat = jnp.concatenate([jnp.broadcast_to(hidden, (S, H)), enc], axis=1)  # (S, 2H)
    energies = (cat @ W.T + b) @ other.reshape(H)                           # (S,)
    ref = jax.nn.softmax(energies).reshape(1, 1, S)

    # f32 streaming path: tight check of forward semantics.
    out_f32 = concat_attention(hidden, encoder_outputs, W, b, other,
                               compute_dtype=jnp.float32)
    jax.block_until_ready(out_f32)
    assert out_f32.shape == (1, 1, S)
    assert jnp.allclose(out_f32, ref, atol=1e-5, rtol=1e-5), (out_f32, ref)

    # Default bf16 streaming path (halves HBM traffic of the dominant enc
    # stream); looser tolerance for reduced-precision inputs, softmax is f32.
    out_bf16 = concat_attention(hidden, encoder_outputs, W, b, other)
    jax.block_until_ready(out_bf16)
    assert out_bf16.shape == (1, 1, S)
    assert jnp.allclose(out_bf16, ref, atol=5e-2, rtol=0.0), (out_bf16, ref)

    print("KERNEL_OK")
</pallas_src>

<mosaic_0001>
module attributes {stable_mosaic.version = 11 : i64} {
  func.func @_gemv_softmax_kernel(%arg0: i32, %arg1: memref<1x32xf32, #tpu.memory_space<vmem>>, %arg2: memref<128x32xf32, #tpu.memory_space<vmem>>, %arg3: memref<1x128xf32, #tpu.memory_space<vmem>>, %arg4: memref<1x1xf32, #tpu.memory_space<vmem>>) attributes {dimension_semantics = [#tpu.dimension_semantics<arbitrary>], iteration_bounds = array<i64: 1>, scalar_prefetch = 0 : i64, scratch_operands = 1 : i64, tpu.core_type = #tpu.core_type<tc>, window_params = [{pipeline_mode = #tpu.pipeline_mode<synchronous>, transform_indices = @transform_0, window_bounds = array<i64: 1, 32>}, {transform_indices = @transform_1, window_bounds = array<i64: 128, 32>}, {pipeline_mode = #tpu.pipeline_mode<synchronous>, transform_indices = @transform_2, window_bounds = array<i64: 1, 128>}]} {
    %c0_i32 = arith.constant 0 : i32
    %0 = arith.cmpi eq, %arg0, %c0_i32 : i32
    %1 = arith.extui %0 : i1 to i32
    %c0_i32_0 = arith.constant 0 : i32
    %2 = arith.cmpi ne, %1, %c0_i32_0 : i32
    scf.if %2 {
      %cst_13 = arith.constant 0xFF800000 : f32
      %24 = vector.broadcast %cst_13 : f32 to vector<1x1xf32>
      %c0_14 = arith.constant 0 : index
      %c0_15 = arith.constant 0 : index
      %25 = vector.load %arg4[%c0_14, %c0_15] : memref<1x1xf32, #tpu.memory_space<vmem>>, vector<1x1xf32>
      tpu.vector_store %arg4[%c0_14, %c0_15], %24 {strides = array<i32>} : memref<1x1xf32, #tpu.memory_space<vmem>>, vector<1x1xf32>,
    } else {
    }
    %c0 = arith.constant 0 : index
    %c0_1 = arith.constant 0 : index
    %3 = vector.load %arg1[%c0, %c0_1] : memref<1x32xf32, #tpu.memory_space<vmem>>, vector<1x32xf32>
    %c0_2 = arith.constant 0 : index
    %c0_3 = arith.constant 0 : index
    %4 = vector.load %arg2[%c0_2, %c0_3] : memref<128x32xf32, #tpu.memory_space<vmem>>, vector<128x32xf32>
    %cst = arith.constant dense<0.000000e+00> : vector<1x128xf32>
    %5 = tpu.matmul %3, %4, %cst {dimension_numbers = #tpu.dot_dimension_numbers<[1], [1], [0], [0], [0, 0, 1, 0], [], []>} : vector<1x32xf32>, vector<128x32xf32>, vector<1x128xf32> -> vector<1x128xf32>
    %c128_i32 = arith.constant 128 : i32
    %6 = arith.muli %arg0, %c128_i32 : i32
    %7 = tpu.iota {dimensions = array<i32: 1>} : vector<1x128xi32>
    %8 = vector.broadcast %6 : i32 to vector<1x128xi32>
    %9 = arith.addi %8, %7 : vector<1x128xi32>
    %c8_i32 = arith.constant 8 : i32
    %10 = vector.broadcast %c8_i32 : i32 to vector<1x128xi32>
    %11 = arith.cmpi slt, %9, %10 : vector<1x128xi32>
    %cst_4 = arith.constant 0xFF800000 : f32
    %12 = vector.broadcast %cst_4 : f32 to vector<1x128xf32>
    %13 = arith.select %11, %5, %12 : vector<1x128xi1>, vector<1x128xf32>
    %14 = arith.index_cast %arg0 : i32 to index
    %c0_5 = arith.constant 0 : index
    %15 = vector.load %arg3[%14, %c0_5] : memref<1x128xf32, #tpu.memory_space<vmem>>, vector<1x128xf32>
    tpu.vector_store %arg3[%14, %c0_5], %13 {strides = array<i32>} : memref<1x128xf32, #tpu.memory_space<vmem>>, vector<1x128xf32>,
    %c0_6 = arith.constant 0 : index
    %c0_7 = arith.constant 0 : index
    %16 = vector.load %arg4[%c0_6, %c0_7] : memref<1x1xf32, #tpu.memory_space<vmem>>, vector<1x1xf32>
    %cst_8 = arith.constant dense<0xFF800000> : vector<1xf32>
    %17 = vector.multi_reduction <maximumf>, %13, %cst_8 [1] : vector<1x128xf32> to vector<1xf32>
    %18 = vector.shape_cast %17 : vector<1xf32> to vector<1x1xf32>
    %19 = arith.maximumf %16, %18 : vector<1x1xf32>
    %c0_9 = arith.constant 0 : index
    %c0_10 = arith.constant 0 : index
    %20 = vector.load %arg4[%c0_9, %c0_10] : memref<1x1xf32, #tpu.memory_space<vmem>>, vector<1x1xf32>
    tpu.vector_store %arg4[%c0_9, %c0_10], %19 {strides = array<i32>} : memref<1x1xf32, #tpu.memory_space<vmem>>, vector<1x1xf32>,
    %c0_i32_11 = arith.constant 0 : i32
    %21 = arith.cmpi eq, %arg0, %c0_i32_11 : i32
    %22 = arith.extui %21 : i1 to i32
    %c0_i32_12 = arith.constant 0 : i32
    %23 = arith.cmpi ne, %22, %c0_i32_12 : i32
    scf.if %23 {
      %c0_13 = arith.constant 0 : index
      %c0_14 = arith.constant 0 : index
      %24 = vector.load %arg3[%c0_13, %c0_14] : memref<1x128xf32, #tpu.memory_space<vmem>>, vector<1x128xf32>
      %c0_15 = arith.constant 0 : index
      %c0_16 = arith.constant 0 : index
      %25 = vector.load %arg4[%c0_15, %c0_16] : memref<1x1xf32, #tpu.memory_space<vmem>>, vector<1x1xf32>
      %26 = vector.broadcast %25 : vector<1x1xf32> to vector<1x128xf32>
      %27 = arith.subf %24, %26 : vector<1x128xf32>
      %28 = math.exp %27 : vector<1x128xf32>
      %cst_17 = arith.constant dense<0.000000e+00> : vector<1xf32>
      %29 = vector.multi_reduction <add>, %28, %cst_17 [1] : vector<1x128xf32> to vector<1xf32>
      %30 = vector.shape_cast %29 : vector<1xf32> to vector<1x1xf32>
      %cst_18 = arith.constant dense<0.000000e+00> : vector<1xf32>
      %31 = vector.multi_reduction <add>, %30, %cst_18 [0] : vector<1x1xf32> to vector<1xf32>
      %32 = vector.shape_cast %31 : vector<1xf32> to vector<1x1xf32>
      %33 = tpu.reciprocal %32 : vector<1x1xf32> -> vector<1x1xf32>
      %34 = vector.broadcast %33 : vector<1x1xf32> to vector<1x128xf32>
      %35 = arith.mulf %28, %34 : vector<1x128xf32>
      %c0_19 = arith.constant 0 : index
      %c0_20 = arith.constant 0 : index
      %36 = vector.load %arg3[%c0_19, %c0_20] : memref<1x128xf32, #tpu.memory_space<vmem>>, vector<1x128xf32>
      tpu.vector_store %arg3[%c0_19, %c0_20], %35 {strides = array<i32>} : memref<1x128xf32, #tpu.memory_space<vmem>>, vector<1x128xf32>,
    } else {
    }
    return
  }
  func.func @transform_0(%arg0: i32) -> (i32, i32) {
    %c0_i32 = arith.constant 0 : i32
    %c0_i32_0 = arith.constant 0 : i32
    %c0_i32_1 = arith.constant 0 : i32
    return %c0_i32, %c0_i32_0 : i32, i32
  }
  func.func @transform_1(%arg0: i32) -> (i32, i32) {
    %c0_i32 = arith.constant 0 : i32
    %c0_i32_0 = arith.constant 0 : i32
    return %arg0, %c0_i32 : i32, i32
  }
  func.func @transform_2(%arg0: i32) -> (i32, i32) {
    %c0_i32 = arith.constant 0 : i32
    %c0_i32_0 = arith.constant 0 : i32
    %c0_i32_1 = arith.constant 0 : i32
    return %c0_i32, %c0_i32_0 : i32, i32
  }
}

</mosaic_0001>

<bundles_post_ra>
// kernel: tpu_custom_call.1
= control target key start
LH: loop header
LB: loop body
LE: loop exit
PB: predicated region body
PF: predicated region fallthrough
CT: control target
= control target key end

     0   :  { %vm35_vm0 = vcmask 261120   ;;  %v312_v1 = vmov 0.0   ;;  %vm313_vm1 = vmmov 0   ;;  %s405_s0 = inlined_call_operand.vmem [shape: f32[1,32], index: 0, kind: input, shape index: {}]   ;;  %s406_s1 = inlined_call_operand.vmem [shape: f32[128,32], index: 1, kind: input, shape index: {}]   ;;  %s407_s2 = inlined_call_operand.hbm [shape: f32[1,128], index: 2, kind: output, shape index: {}]  }
   0x1   :  { %v34_v0 = vld [vmem:[%s406_s1 + $0x78] sm:$0xff]  ;;  %245 = vmatprep.subr.mxu0 %v312_v1  ;;  %277 = vmatprep.mubr.msk.f32.mxu0 %vm313_vm1, %v312_v1  ;;  %v33_v2 = vld [vmem:[%s406_s1 + $0x70] sm:$0xff] }
   0x2   :  { %246 = vmatpush3.xpose.msk.msra.mxu0 %vm35_vm0, %v34_v0 }
   0x3   :  { %247 = vmatprep.subr.mxu0 %v312_v1 }
   0x4   :  { %7 = vsyncpa [#allocation4], 0  ;;  %v32_v3 = vld [vmem:[%s406_s1 + $0x68] sm:$0xff]  ;;  %v31_v4 = vld [vmem:[%s406_s1 + $0x60] sm:$0xff]  ;;  %v158_v18 = vlaneseq  ;;  %vm166_vm3 = vcmask 1040384   ;;  %vm16_vm4 = vcmask 0  }
   0x5   :  { %v30_v5 = vld [vmem:[%s406_s1 + $0x58] sm:$0xff]  ;;  %v29_v6 = vld [vmem:[%s406_s1 + $0x50] sm:$0xff]  ;;  %v28_v7 = vld [vmem:[%s406_s1 + $0x48] sm:$0xff]  ;;  %v314_v24 = vmov -inf   ;;  %v315_v25 = vmov 0  }
   0x6   :  { %248 = vmatpush3.xpose.msk.msra.mxu0 %vm35_vm0, %v33_v2  ;;  %v27_v8 = vld [vmem:[%s406_s1 + $0x40] sm:$0xff]  ;;  %v26_v9 = vld [vmem:[%s406_s1 + $0x38] sm:$0xff]  ;;  %v25_v10 = vld [vmem:[%s406_s1 + $0x30] sm:$0xff]  ;;  %v159_v19 = vand.u32 127, %v158_v18  ;;  %17 = vst.msk [vmem:[#allocation2] sm:$0x1] %vm16_vm4, %v314_v24  ;;  %285 = vset.pattern.permute.xlu0 %v315_v25 }
   0x7   :  { %249 = vmatprep.subr.mxu0 %v312_v1  ;;  %v24_v11 = vld [vmem:[%s406_s1 + $0x28] sm:$0xff]  ;;  %v23_v12 = vld [vmem:[%s406_s1 + $0x20] sm:$0xff]  ;;  %v22_v13 = vld [vmem:[%s406_s1 + $0x18] sm:$0xff]  ;;  %v184_v30 = vshrl.u32 %v158_v18, 7 }
   0x8   :  { %v21_v14 = vld [vmem:[%s406_s1 + $0x10] sm:$0xff]  ;;  %v20_v15 = vld [vmem:[%s406_s1 + $0x8] sm:$0xff]  ;;  %v19_v16 = vld [vmem:[%s406_s1] sm:$0xff]  ;;  %vm162_vm2 = vcmp.lt.s32.totalorder %v159_v19, 8 }
   0x9   :  { %v18_v17 = vld [vmem:[%s405_s0] sm:$0x1]  ;;  %v185_v31 = vsub.s32 0, %v184_v30  ;;  %s316_s0 = smov [#allocation3]  }
   0xa   :  { %250 = vmatpush3.xpose.msk.msra.mxu0 %vm35_vm0, %v32_v3  ;;  %s203_s1 = sshll.u32 %s316_s0, 4  ;;  %s204_s1 = int_to_ptr.vmem [resolvable:$true] %s203_s1 }
   0xb   :  { %251 = vmatprep.subr.mxu0 %v312_v1  ;;  %s290_s15 = scalar_lea.vmem %s204_s1, 16  ;;  %s294_s16 = scalar_lea.vmem %s204_s1, 32 }
   0xc   :  { %p291_p0 = scmp.ne.s32.totalorder %s204_s1, %s290_s15  ;;  %p295_p1 = scmp.lt.s32.totalorder %s204_s1, %s204_s1 }
   0xd   :  { %v165_v26 = vld [vmem:[#allocation2] sm:$0x1]  ;;  %p296_p2 = scmp.lt.s32.totalorder %s294_s16, %s290_s15 }
   0xe   :  { %252 = vmatpush3.xpose.msk.msra.mxu0 %vm35_vm0, %v31_v4 }
   0xf   :  { %253 = vmatprep.subr.mxu0 %v312_v1  ;;  %p297_p3 = por %p296_p2, %p295_p1 }
  0x11   :  { %p298_p4 = pnand %p297_p3, %p291_p0 }
  0x12   :  { %254 = vmatpush3.xpose.msk.msra.mxu0 %vm35_vm0, %v30_v5 }
  0x13   :  { %255 = vmatprep.subr.mxu0 %v312_v1 }
  0x16   :  { %256 = vmatpush3.xpose.msk.msra.mxu0 %vm35_vm0, %v29_v6 }
  0x17   :  { %257 = vmatprep.subr.mxu0 %v312_v1 }
  0x1a   :  { %258 = vmatpush3.xpose.msk.msra.mxu0 %vm35_vm0, %v28_v7 }
  0x1b   :  { %259 = vmatprep.subr.mxu0 %v312_v1 }
  0x1e   :  { %260 = vmatpush3.xpose.msk.msra.mxu0 %vm35_vm0, %v27_v8 }
  0x1f   :  { %261 = vmatprep.subr.mxu0 %v312_v1 }
  0x22   :  { %262 = vmatpush3.xpose.msk.msra.mxu0 %vm35_vm0, %v26_v9 }
  0x23   :  { %263 = vmatprep.subr.mxu0 %v312_v1 }
  0x26   :  { %264 = vmatpush3.xpose.msk.msra.mxu0 %vm35_vm0, %v25_v10 }
  0x27   :  { %265 = vmatprep.subr.mxu0 %v312_v1 }
  0x2a   :  { %266 = vmatpush3.xpose.msk.msra.mxu0 %vm35_vm0, %v24_v11 }
  0x2b   :  { %267 = vmatprep.subr.mxu0 %v312_v1 }
  0x2e   :  { %268 = vmatpush3.xpose.msk.msra.mxu0 %vm35_vm0, %v23_v12 }
  0x2f   :  { %269 = vmatprep.subr.mxu0 %v312_v1 }
  0x32   :  { %270 = vmatpush3.xpose.msk.msra.mxu0 %vm35_vm0, %v22_v13 }
  0x33   :  { %271 = vmatprep.subr.mxu0 %v312_v1 }
  0x36   :  { %272 = vmatpush3.xpose.msk.msra.mxu0 %vm35_vm0, %v21_v14 }
  0x37   :  { %273 = vmatprep.subr.mxu0 %v312_v1 }
  0x3a   :  { %274 = vmatpush3.xpose.msk.msra.mxu0 %vm35_vm0, %v20_v15 }
  0x3b   :  { %275 = vmatprep.subr.mxu0 %v312_v1 }
  0x3e   :  { %276 = vmatpush3.xpose.msk.msra.mxu0 %vm35_vm0, %v19_v16 }
  0x41   :  { %278 = vmatmul.mubr.msk.f32.vlgmr.msra.gmra.mxu0 %vm35_vm0, %v18_v17 }
 0x101   :  { %v153_v20 = vpop.f32.mrf.mxu0 }
 0x102   :  { %v163_v21 = vsel %vm162_vm2, %v153_v20, -inf }
 0x103   :  { %164 = vst [vmem:[#allocation3] sm:$0x1] %v163_v21  ;;  %v279_v22 = vpop.f32.mrf.mxu0  ;;  %v167_v23 = vsel %vm166_vm3, %v163_v21, -inf }
 0x104   :  { %168 = vmax.xlane.f32.xlu0 %v167_v23 }
 0x10a   :  { %v176_v34 = vld [vmem:[#allocation3] sm:$0x1] }
 0x18d   :  { %v169_v27 = vpop.xlane.xlu0 %168 }
 0x18e   :  { %v170_v28 = vmax.f32 %v165_v26, %v169_v27 }
 0x190   :  { %172 = vst.msk [vmem:[#allocation2] sm:$0x1] %vm16_vm4, %v170_v28 }
 0x197   :  { %v177_v29 = vld [vmem:[#allocation2] sm:$0x1] }
 0x198   :  { %180 = vperm.xlu0 %285, %v177_v29  }
 0x213   :  { %v181_v32 = vpop.permute.xlu0 %180 }
 0x214   :  { %v186_v33 = vrot.slane %v181_v32, %v185_v31 }
 0x216   :  { %v187_v35 = vsub.f32 %v176_v34, %v186_v33 }
 0x218   :  { %v188_v36 = vmul.f32 1.442695, %v187_v35 }
 0x21a   :  { %286 = vpow2.f32 %v188_v36 }
 0x227   :  { %v287_v37 = vpop.eup %286 }
 0x228   :  { %v190_v38 = vsel %vm166_vm3, %v287_v37, 0.0 }
 0x229   :  { %191 = vadd.xlane.f32.xlu1 %v190_v38 }
 0x2b2   :  { %v192_v39 = vpop.xlane.xlu1 %191 }
 0x2b3   :  { %288 = vrcp.f32 %v192_v39 }
 0x2c0   :  { %v289_v40 = vpop.eup %288 }
 0x2c1   :  { %v195_v41 = vmul.f32 %v289_v40, %v287_v37 }
 0x2c3   :  { %196 = vst [vmem:[#allocation3] sm:$0x1] %v195_v41 }
 0x2c4   :  { %301 = shalt.err (!%p298_p4)
}
 0x2c5   :  { %206 = dma.vmem_to_hbm [thread:$0]  %s204_s1, 16, %s407_s2, [#allocation4]  }
 0x2c6   :  { %310 = dma.done.wait [#allocation4], 16  }
 0x2c7   :  { %311 = vsyncadd [#allocation4], 4294967280 }
 0x2c8   :  { %210 = vsyncpa [#allocation4], 1 }

</bundles_post_ra>
